<compile_context>
chip_gen: v5e
topology: v5e:2x2
jax: 0.10.0
libtpu: 0.0.40
codegen_flags: <defaults>
</compile_context>

<pallas_src>
import jax
import jax.numpy as jnp
from jax import lax
from jax.experimental import pallas as pl
from jax.experimental.pallas import tpu as pltpu

LANES = 128
SUBLANES = 8
MAX_TILE_ROWS = 4096       # 4096 x 128 f32 = 2 MiB per input tile
CHUNK_ROWS = 256           # in-kernel reduction chunk (256 x 128 f32 = 128 KiB)
TARGET_BLOCKS = 4          # >= 2 blocks so both v7x TensorCores get work


def _round_up(x, m):
    return ((x + m - 1) // m) * m


def _stable_softplus(x):
    return jnp.maximum(x, 0.0) + jnp.log1p(jnp.exp(-jnp.abs(x)))


def _make_kernel(negates, valid_rows, tile_rows, mask_needed):
    """Kernel computing per-block (8,128) partial sums of softplus(+/- x)."""
    n_in = len(negates)
    chunk = min(CHUNK_ROWS, tile_rows)
    nfull = tile_rows // chunk
    rem = tile_rows - nfull * chunk          # multiple of SUBLANES when nonzero

    def kernel(*refs):
        in_refs = refs[:n_in]
        out_ref = refs[n_in]
        block_base = pl.program_id(0) * tile_rows

        def accumulate(start, length, accs):
            if mask_needed:
                row_ids = (block_base + start
                           + lax.broadcasted_iota(jnp.int32, (length, LANES), 0))
                mask = row_ids < valid_rows
            new_accs = []
            for ref, neg, acc in zip(in_refs, negates, accs):
                x = ref[pl.ds(start, length), :].astype(jnp.float32)
                if neg:
                    x = -x
                sp = _stable_softplus(x)
                if mask_needed:
                    sp = jnp.where(mask, sp, 0.0)
                # (length,128) -> (length//8, 8, 128); summing the leading
                # (non-tiled) axis is pure VPU vreg adds.
                new_accs.append(
                    acc + jnp.sum(sp.reshape(length // SUBLANES, SUBLANES, LANES),
                                  axis=0))
            return tuple(new_accs)

        accs = tuple(jnp.zeros((SUBLANES, LANES), jnp.float32)
                     for _ in range(n_in))
        if nfull == 1:
            accs = accumulate(0, chunk, accs)
        elif nfull > 1:
            def body(c, accs):
                start = pl.multiple_of(c * chunk, chunk)
                return accumulate(start, chunk, accs)
            accs = lax.fori_loop(0, nfull, body, accs)
        if rem:
            accs = accumulate(nfull * chunk, rem, accs)

        for i in range(n_in):
            out_ref[0, i] = accs[i]

    return kernel


def _partial_sums(slabs, negates, sub):
    """Sum of softplus(+/- slab) per input, computed with one pallas_call.

    slabs: tuple of (rows, 128) arrays (all the same shape).
    Returns an f32 array of shape (len(slabs),).
    """
    rows = slabs[0].shape[0]
    # Enough blocks for v7x megacore sharding, big enough tiles to amortize
    # the ~0.35 us per-grid-step pipeline overhead on v5e/v6e.
    num_blocks = max(pl.cdiv(rows, MAX_TILE_ROWS),
                     min(TARGET_BLOCKS, max(rows // sub, 1)))
    tile_rows = _round_up(pl.cdiv(rows, num_blocks), sub)
    num_blocks = pl.cdiv(rows, tile_rows)
    mask_needed = (rows % tile_rows) != 0

    n_in = len(slabs)
    kernel = _make_kernel(tuple(negates), rows, tile_rows, mask_needed)

    out = pl.pallas_call(
        kernel,
        out_shape=jax.ShapeDtypeStruct((num_blocks, n_in, SUBLANES, LANES),
                                       jnp.float32),
        grid_spec=pltpu.PrefetchScalarGridSpec(
            num_scalar_prefetch=0,
            grid=(num_blocks,),
            in_specs=[pl.BlockSpec((tile_rows, LANES), lambda i: (i, 0))
                      for _ in slabs],
            out_specs=pl.BlockSpec((1, n_in, SUBLANES, LANES),
                                   lambda i: (i, 0, 0, 0)),
        ),
        compiler_params=pltpu.CompilerParams(
            dimension_semantics=("parallel",),
            vmem_limit_bytes=32 * 1024 * 1024),
    )(*slabs)

    return jnp.sum(out, axis=(0, 2, 3))          # (n_in,)


def _prep(x):
    """Split x into a lane-dense slab (no copy when aligned) and a tiny tail."""
    flat = x.reshape(-1)                           # bitcast, free
    n = flat.shape[0]
    sub = SUBLANES * max(1, 4 // jnp.dtype(x.dtype).itemsize)
    granule = sub * LANES
    rows_main = (n // granule) * sub
    n_main = rows_main * LANES
    if rows_main:
        src = flat if n_main == n else flat[:n_main]   # rare copy (misaligned only)
        slab = src.reshape(rows_main, LANES)
    else:
        slab = None
    tail = None if n_main == n else flat[n_main:]       # < sub*128 elements
    return slab, tail, n, sub


def _tail_sum(tail, negate):
    if tail is None or tail.size == 0:
        return jnp.float32(0.0)
    t = tail.astype(jnp.float32)
    if negate:
        t = -t
    return jnp.sum(_stable_softplus(t))


@jax.jit
def softplus_d_loss(fake, real):
    f_slab, f_tail, n_f, sub_f = _prep(fake)
    r_slab, r_tail, n_r, sub_r = _prep(real)

    if (f_slab is not None and r_slab is not None
            and f_slab.shape == r_slab.shape):
        # Fused path: one kernel launch for both tensors.
        sums = _partial_sums((f_slab, r_slab), (False, True),
                             sub=max(sub_f, sub_r))
        sum_f, sum_r = sums[0], sums[1]
    else:
        sum_f = (_partial_sums((f_slab,), (False,), sub_f)[0]
                 if f_slab is not None else jnp.float32(0.0))
        sum_r = (_partial_sums((r_slab,), (True,), sub_r)[0]
                 if r_slab is not None else jnp.float32(0.0))

    sum_f = sum_f + _tail_sum(f_tail, negate=False)
    sum_r = sum_r + _tail_sum(r_tail, negate=True)
    return sum_f / jnp.float32(n_f) + sum_r / jnp.float32(n_r)


def _reference(fake, real):
    return (jax.nn.softplus(fake.astype(jnp.float32)).mean()
            + jax.nn.softplus(-real.astype(jnp.float32)).mean())


if __name__ == "__main__":
    key = jax.random.PRNGKey(0)
    kf, kr, kf2, kr2 = jax.random.split(key, 4)

    # Typical GAN discriminator logits, NCHW-shaped (tile-aligned fast path).
    fake = jax.random.normal(kf, (2, 4, 16, 16), dtype=jnp.float32)
    real = jax.random.normal(kr, (2, 4, 16, 16), dtype=jnp.float32)
    loss = softplus_d_loss(fake, real)
    jax.block_until_ready(loss)
    ref = _reference(fake, real)
    assert jnp.allclose(loss, ref, atol=1e-5, rtol=1e-5), (loss, ref)

    # Misaligned shape: exercises the partial-block row mask + JAX tail path.
    fake2 = jax.random.normal(kf2, (5, 1030), dtype=jnp.float32)
    real2 = jax.random.normal(kr2, (5, 1030), dtype=jnp.float32)
    loss2 = softplus_d_loss(fake2, real2)
    jax.block_until_ready(loss2)
    ref2 = _reference(fake2, real2)
    assert jnp.allclose(loss2, ref2, atol=1e-5, rtol=1e-5), (loss2, ref2)

    print("KERNEL_OK")
</pallas_src>

<mosaic_0001>
module attributes {stable_mosaic.version = 11 : i64} {
  func.func @kernel(%arg0: i32, %arg1: memref<8x128xf32, #tpu.memory_space<vmem>>, %arg2: memref<8x128xf32, #tpu.memory_space<vmem>>, %arg3: memref<1x2x8x128xf32, #tpu.memory_space<vmem>>) attributes {dimension_semantics = [#tpu.dimension_semantics<parallel>], iteration_bounds = array<i64: 2>, scalar_prefetch = 0 : i64, scratch_operands = 0 : i64, tpu.core_type = #tpu.core_type<tc>, window_params = [{transform_indices = @transform_0, window_bounds = array<i64: 8, 128>}, {transform_indices = @transform_1, window_bounds = array<i64: 8, 128>}, {transform_indices = @transform_2, window_bounds = array<i64: 1, 2, 8, 128>}]} {
    %cst = arith.constant 0.000000e+00 : f32
    %0 = vector.broadcast %cst : f32 to vector<8x128xf32>
    %cst_0 = arith.constant 0.000000e+00 : f32
    %1 = vector.broadcast %cst_0 : f32 to vector<8x128xf32>
    %c0 = arith.constant 0 : index
    %c0_1 = arith.constant 0 : index
    %2 = vector.load %arg1[%c0, %c0_1] : memref<8x128xf32, #tpu.memory_space<vmem>>, vector<8x128xf32>
    %cst_2 = arith.constant 0.000000e+00 : f32
    %3 = vector.broadcast %cst_2 : f32 to vector<8x128xf32>
    %4 = arith.maximumf %2, %3 : vector<8x128xf32>
    %5 = math.absf %2 : vector<8x128xf32>
    %cst_3 = arith.constant 0.000000e+00 : f32
    %6 = vector.broadcast %cst_3 : f32 to vector<8x128xf32>
    %7 = arith.subf %6, %5 : vector<8x128xf32>
    %8 = math.exp %7 : vector<8x128xf32>
    %9 = math.log1p %8 : vector<8x128xf32>
    %10 = arith.addf %4, %9 : vector<8x128xf32>
    %11 = vector.shape_cast %10 : vector<8x128xf32> to vector<1x8x128xf32>
    %cst_4 = arith.constant dense<0.000000e+00> : vector<8x128xf32>
    %12 = vector.multi_reduction <add>, %11, %cst_4 [0] : vector<1x8x128xf32> to vector<8x128xf32>
    %13 = arith.addf %0, %12 : vector<8x128xf32>
    %c0_5 = arith.constant 0 : index
    %c0_6 = arith.constant 0 : index
    %14 = vector.load %arg2[%c0_5, %c0_6] : memref<8x128xf32, #tpu.memory_space<vmem>>, vector<8x128xf32>
    %cst_7 = arith.constant 0.000000e+00 : f32
    %15 = vector.broadcast %cst_7 : f32 to vector<8x128xf32>
    %16 = arith.subf %15, %14 : vector<8x128xf32>
    %cst_8 = arith.constant 0.000000e+00 : f32
    %17 = vector.broadcast %cst_8 : f32 to vector<8x128xf32>
    %18 = arith.maximumf %16, %17 : vector<8x128xf32>
    %19 = math.absf %16 : vector<8x128xf32>
    %cst_9 = arith.constant 0.000000e+00 : f32
    %20 = vector.broadcast %cst_9 : f32 to vector<8x128xf32>
    %21 = arith.subf %20, %19 : vector<8x128xf32>
    %22 = math.exp %21 : vector<8x128xf32>
    %23 = math.log1p %22 : vector<8x128xf32>
    %24 = arith.addf %18, %23 : vector<8x128xf32>
    %25 = vector.shape_cast %24 : vector<8x128xf32> to vector<1x8x128xf32>
    %cst_10 = arith.constant dense<0.000000e+00> : vector<8x128xf32>
    %26 = vector.multi_reduction <add>, %25, %cst_10 [0] : vector<1x8x128xf32> to vector<8x128xf32>
    %27 = arith.addf %1, %26 : vector<8x128xf32>
    %c0_11 = arith.constant 0 : index
    %c0_12 = arith.constant 0 : index
    %c0_13 = arith.constant 0 : index
    %c0_14 = arith.constant 0 : index
    %28 = vector.load %arg3[%c0_11, %c0_12, %c0_13, %c0_14] : memref<1x2x8x128xf32, #tpu.memory_space<vmem>>, vector<1x1x8x128xf32>
    %29 = vector.shape_cast %28 : vector<1x1x8x128xf32> to vector<8x128xf32>
    %30 = vector.shape_cast %13 : vector<8x128xf32> to vector<1x1x8x128xf32>
    tpu.vector_store %arg3[%c0_11, %c0_12, %c0_13, %c0_14], %30 {strides = array<i32>} : memref<1x2x8x128xf32, #tpu.memory_space<vmem>>, vector<1x1x8x128xf32>,
    %c0_15 = arith.constant 0 : index
    %c1 = arith.constant 1 : index
    %c0_16 = arith.constant 0 : index
    %c0_17 = arith.constant 0 : index
    %31 = vector.load %arg3[%c0_15, %c1, %c0_16, %c0_17] : memref<1x2x8x128xf32, #tpu.memory_space<vmem>>, vector<1x1x8x128xf32>
    %32 = vector.shape_cast %31 : vector<1x1x8x128xf32> to vector<8x128xf32>
    %33 = vector.shape_cast %27 : vector<8x128xf32> to vector<1x1x8x128xf32>
    tpu.vector_store %arg3[%c0_15, %c1, %c0_16, %c0_17], %33 {strides = array<i32>} : memref<1x2x8x128xf32, #tpu.memory_space<vmem>>, vector<1x1x8x128xf32>,
    return
  }
  func.func @transform_0(%arg0: i32) -> (i32, i32) {
    %c0_i32 = arith.constant 0 : i32
    %c0_i32_0 = arith.constant 0 : i32
    return %arg0, %c0_i32 : i32, i32
  }
  func.func @transform_1(%arg0: i32) -> (i32, i32) {
    %c0_i32 = arith.constant 0 : i32
    %c0_i32_0 = arith.constant 0 : i32
    return %arg0, %c0_i32 : i32, i32
  }
  func.func @transform_2(%arg0: i32) -> (i32, i32, i32, i32) {
    %c0_i32 = arith.constant 0 : i32
    %c0_i32_0 = arith.constant 0 : i32
    %c0_i32_1 = arith.constant 0 : i32
    %c0_i32_2 = arith.constant 0 : i32
    return %arg0, %c0_i32, %c0_i32_0, %c0_i32_1 : i32, i32, i32, i32
  }
}

</mosaic_0001>

<bundles_post_ra>
// kernel: softplus_d_loss.1
= control target key start
LH: loop header
LB: loop body
LE: loop exit
PB: predicated region body
PF: predicated region fallthrough
CT: control target
= control target key end

     0   :  { %s317_s9 = smov 0   ;;  %s341_s0 = inlined_call_operand.vmem [shape: f32[16,128], index: 0, kind: input, shape index: {}]   ;;  %s342_s1 = inlined_call_operand.vmem [shape: f32[16,128], index: 1, kind: input, shape index: {}]   ;;  %s343_s2 = inlined_call_operand.vmem [shape: f32[2,2,8,128], index: 2, kind: output, shape index: {}]  }
   0x1 LB: > { %s265_s10 = sadd.s32 4294967295, %s300_s9   ;;  %p269_p0 = scmp.ge.s32.totalorder %s300_s9, 1  ;;  %s300_s9 = sphi %s317_s9, %s12_s9  }
   0x2   : > { %p120_p1 = scmp.lt.s32.totalorder %s300_s9, 3 }
   0x4   : > { %p121_p2 = pnand %p269_p0, %p120_p1 }
   0x5   : > { %p145_p3 = scmp.lt.s32.totalorder (!%p121_p2), %s265_s10, 1 }
   0x6   : > { %124 = sbr.rel (%p121_p2) target bundleno = 46 (0x2e), region = 28 }
   0xb   : > { %s345_s10 = smov (!%p145_p3, %s265_s10), 1 }
   0xc   : > { %s270_s11 = sshll.u32 %s345_s10, 3  ;;  %s277_s18 = sshll.u32 %s345_s10, 4 }
   0xd   : > { %s148_s14 = scalar_lea.vmem %s341_s0, %s270_s11  ;;  %s152_s17 = scalar_lea.vmem %s342_s1, %s270_s11 }
   0xe   : > { %v158_v0 = vld [vmem:[%s148_s14] sm:$0xff]  ;;  %s157_s21 = scalar_lea.vmem %s343_s2, %s277_s18 }
   0xf   : > { %v176_v1 = vld [vmem:[%s152_s17] sm:$0xff]  ;;  %v160_v2 = vand.u32 2147483647, %v158_v0  ;;  %v159_v21 = vmax.f32 %v158_v0, 0.0 }
  0x10   : > { %v177_v3 = vsub.f32 0.0, %v176_v1 }
  0x11   : > { %v161_v4 = vsub.f32 0.0, %v160_v2 }
  0x12   : > { %v179_v5 = vand.u32 2147483647, %v177_v3  ;;  %v178_v25 = vmax.f32 %v177_v3, 0.0 }
  0x13   : > { %v162_v6 = vmul.f32 1.442695, %v161_v4 }
  0x14   : > { %v180_v7 = vsub.f32 0.0, %v179_v5 }
  0x15   : > { %286 = vpow2.f32 %v162_v6 }
  0x16   : > { %v181_v8 = vmul.f32 1.442695, %v180_v7 }
  0x18   : > { %288 = vpow2.f32 %v181_v8 }
  0x1b   : > { %v287_v9 = vpop.eup %286 }
  0x1c   : > { %v164_v10 = vadd.f32 1.0, %v287_v9  ;;  %v167_v11 = vmul.f32 -0.5, %v287_v9  ;;  %v170_v16 = vand.u32 2147483647, %v287_v9 }
  0x1e   : > { %v289_v12 = vpop.eup %288  ;;  %290 = vlog2.f32 %v164_v10  ;;  %v168_v14 = vadd.f32 1.0, %v167_v11  ;;  %vm171_vm0 = vcmp.lt.f32.partialorder %v170_v16, 0.0004427343 }
  0x1f   : > { %v183_v13 = vadd.f32 1.0, %v289_v12  ;;  %v186_v15 = vmul.f32 -0.5, %v289_v12  ;;  %v189_v18 = vand.u32 2147483647, %v289_v12 }
  0x20   : > { %v169_v19 = vmul.f32 %v287_v9, %v168_v14 }
  0x21   : > { %292 = vlog2.f32 %v183_v13  ;;  %v187_v17 = vadd.f32 1.0, %v186_v15  ;;  %vm190_vm1 = vcmp.lt.f32.partialorder %v189_v18, 0.0004427343 }
  0x23   : > { %v188_v23 = vmul.f32 %v289_v12, %v187_v17 }
  0x24   : > { %v291_v20 = vpop.eup %290 }
  0x25   : > { %v166_v22 = vmul.f32 0.6931472, %v291_v20 }
  0x27   : > { %v293_v24 = vpop.eup %292  ;;  %v172_v26 = vsel %vm171_vm0, %v169_v19, %v166_v22 }
  0x28   : > { %v185_v27 = vmul.f32 0.6931472, %v293_v24  ;;  %v173_v28 = vadd.f32 %v172_v26, %v159_v21 }
  0x2a   : > { %v191_v29 = vsel %vm190_vm1, %v188_v23, %v185_v27  ;;  %195 = vst [vmem:[%s157_s21] sm:$0xff] %v173_v28 }
  0x2b   : > { %v192_v30 = vadd.f32 %v191_v29, %v178_v25 }
  0x2d   : > { %274 = vst [vmem:[%s157_s21 + $0x8] sm:$0xff] %v192_v30 }
  0x2e PF: > { %s12_s9 = sadd.s32 1, %s300_s9  }
  0x2f   : > { %p9_p4 = scmp.ge.s32.totalorder %s12_s9, 4  }
  0x31   :  { %11 = sbr.rel (!%p9_p4) target bundleno = 1 (0x1), region = 62 }

</bundles_post_ra>
